<compile_context>
chip_gen: v5e
topology: v5e:2x2
jax: 0.10.0
libtpu: 0.0.40
codegen_flags: <defaults>
</compile_context>

<pallas_src>
import jax
import jax.numpy as jnp
from jax.experimental import pallas as pl
from jax.experimental.pallas import tpu as pltpu


# ----------------------------------------------------------------------------
# Kernel 1: image normalization   out = img * (1/std) + (-mean/std)
# ----------------------------------------------------------------------------
def _preprocess_kernel(img_ref, scale_ref, bias_ref, out_ref):
    # img_ref / out_ref: [row_tile, lane_tile] tile of the [N*C, H*W] view.
    # scale_ref / bias_ref: [row_tile, 1] per-row constants (lane-broadcast is free).
    out_ref[...] = img_ref[...] * scale_ref[...] + bias_ref[...]


def _pick_tile(extent: int, unit: int, cap: int) -> int:
    """Largest divisor of `extent` that is a multiple of `unit` and <= cap.
    Caller guarantees extent % unit == 0."""
    t = min(extent, max(unit, cap - cap % unit))
    t -= t % unit
    while extent % t != 0:
        t -= unit
    return t


def preprocess_images(images, pixel_mean, pixel_std, *, row_cap=256, lane_cap=4096):
    """images: [N, C, H, W] float32; pixel_mean/pixel_std: [C] float32."""
    N, C, H, W = images.shape
    R, L = N * C, H * W
    img2d = images.reshape(R, L).astype(jnp.float32)

    # Per-row normalization constants (row r of the [N*C, ...] view is channel r % C).
    inv_std = (1.0 / pixel_std).astype(jnp.float32)                  # [C]
    neg_mean_over_std = (-pixel_mean / pixel_std).astype(jnp.float32)
    scale_rows = jnp.tile(inv_std, N).reshape(R, 1)                  # [R, 1]
    bias_rows = jnp.tile(neg_mean_over_std, N).reshape(R, 1)         # [R, 1]

    # Pad the lane axis to a multiple of 128 so every tile is lane-dense (unmasked vst)
    # and the grid never collapses to a single oversized block (v7x 64 MiB VMEM guard).
    L_pad = ((L + 127) // 128) * 128
    if L_pad != L:
        img2d = jnp.pad(img2d, ((0, 0), (0, L_pad - L)))

    # Rows (N*C) are tiny; if not a multiple of 8, a single full-extent row block is
    # legal per the (8,128) rule and costs nothing.
    row_tile = _pick_tile(R, 8, row_cap) if R % 8 == 0 else R
    lane_tile = _pick_tile(L_pad, 128, lane_cap)
    grid = (R // row_tile, L_pad // lane_tile)

    out = pl.pallas_call(
        _preprocess_kernel,
        out_shape=jax.ShapeDtypeStruct((R, L_pad), jnp.float32),
        grid=grid,
        in_specs=[
            pl.BlockSpec((row_tile, lane_tile), lambda i, j: (i, j)),
            pl.BlockSpec((row_tile, 1), lambda i, j: (i, 0)),   # re-DMAs only on row change
            pl.BlockSpec((row_tile, 1), lambda i, j: (i, 0)),
        ],
        out_specs=pl.BlockSpec((row_tile, lane_tile), lambda i, j: (i, j)),
        compiler_params=pltpu.CompilerParams(
            dimension_semantics=("parallel", "parallel"),
            # Max footprint: (in + out) * 2 double-buffers * 4 MiB block ~= 16 MiB,
            # well under this limit and under v7x's 64 MiB physical VMEM.
            vmem_limit_bytes=64 * 1024 * 1024,
        ),
    )(img2d, scale_rows, bias_rows)

    if L_pad != L:
        out = out[:, :L]
    return out.reshape(N, C, H, W)


# ----------------------------------------------------------------------------
# Kernel 2: classification head (whole batch, single grid step)
#   adaptive_avg_pool2d(feat, (1,1)) -> 1x1 conv (bias=False)
# ----------------------------------------------------------------------------
def _cls_head_kernel(x_ref, w_ref, logits_ref):
    # x_ref: [N, C, S] f32 — native NCHW view (C on sublanes, spatial on lanes).
    # w_ref: [C, K_pad] f32 (1x1-conv weight, lane-dense K).
    pooled = jnp.mean(x_ref[...], axis=-1)                         # [N, C] spatial mean (XLU)
    logits_ref[...] = jnp.dot(pooled, w_ref[...],                  # [N, K_pad] on the MXU
                              preferred_element_type=jnp.float32)


def classification_head_forward(features_nchw, cls_weight):
    """features_nchw: [N, C, H, W]; cls_weight: [K, C, 1, 1] (PyTorch conv layout).

    Returns (pred_logits_flat, probs_flat), matching
    classification_head(adaptive_avg_pool2d(feat,(1,1))).flatten() + sigmoid.
    """
    N, C, H, W = features_nchw.shape
    K = cls_weight.shape[0]
    S = H * W
    # Free view reshape on the native layout — no full-tensor transpose / extra HBM pass.
    x = features_nchw.reshape(N, C, S).astype(jnp.float32)
    # TODO(synk): for very large res5 blocks (v7x 64 MiB VMEM) tile over S with an
    #             'arbitrary' accumulator axis and/or cast features/weights to bf16.

    K_pad = max(128, ((K + 127) // 128) * 128)                     # lane-dense output stores
    w = cls_weight.reshape(K, C).T.astype(jnp.float32)             # [C, K]
    w_pad = jnp.zeros((C, K_pad), jnp.float32).at[:, :K].set(w)

    logits_pad = pl.pallas_call(
        _cls_head_kernel,
        out_shape=jax.ShapeDtypeStruct((N, K_pad), jnp.float32),
        grid=(1,),
        in_specs=[
            pl.BlockSpec((N, C, S), lambda n: (0, 0, 0)),
            pl.BlockSpec((C, K_pad), lambda n: (0, 0)),
        ],
        out_specs=pl.BlockSpec((N, K_pad), lambda n: (0, 0)),
    )(x, w_pad)

    # PyTorch: pred_logits = pred_logits.flatten()  (flattens across batch too).
    # NB: slice off the zero-padded K lanes BEFORE sigmoid/flatten.
    pred_logits = logits_pad[:, :K].reshape(-1)
    probs = jax.nn.sigmoid(pred_logits)                            # tiny; free in XLA
    return pred_logits, probs


# ----------------------------------------------------------------------------
# IRNet forward (classification mode, inference)
# ----------------------------------------------------------------------------
def irnet_classification_forward(image, res5_features, params, threshold=0.5):
    # 1) preprocess (tiled, pipelined elementwise kernel); result is what the backbone
    #    would consume, so the pass is not dead traffic.
    normalized = preprocess_images(image, params["pixel_mean"], params["pixel_std"])
    # TODO(synk): backbone (build_backbone / ResNet -> res5) is an external detectron2
    # component and is not translated; synthetic res5 features feed the head directly.

    # 2) classification head (in-kernel pool + 1x1-conv matmul, single invocation)
    pred_logits, probs = classification_head_forward(res5_features, params["cls_weight"])

    # 3) thresholding; .nonzero() / result-list assembly is data-dependent -> plain JAX/host.
    pred_mask = probs > threshold
    return pred_logits, probs, pred_mask, normalized


def init_params(key, in_channels, num_classes):
    # c2_xavier_fill == kaiming_uniform_(a=1): U(-b, b), b = sqrt(6 / (2 * fan_in))
    fan_in = in_channels  # 1x1 conv
    bound = (6.0 / (2.0 * fan_in)) ** 0.5
    k_w, _ = jax.random.split(key)
    cls_weight = jax.random.uniform(
        k_w, (num_classes, in_channels, 1, 1), jnp.float32, -bound, bound
    )
    pixel_mean = jnp.array([103.530, 116.280, 123.675], dtype=jnp.float32)
    pixel_std = jnp.array([57.375, 57.120, 58.395], dtype=jnp.float32)
    return {"cls_weight": cls_weight, "pixel_mean": pixel_mean, "pixel_std": pixel_std}


if __name__ == "__main__":
    # Small, deterministic shapes; image large enough to exercise the lane grid (3 blocks).
    N, C_IMG, H_IMG, W_IMG = 2, 3, 96, 128      # raw image batch (H*W = 12288 lanes)
    C_RES5, H_F, W_F = 32, 8, 8                 # synthetic res5 feature map
    NUM_CLASSES = 16
    THRESHOLD = 0.5

    key = jax.random.PRNGKey(0)
    k_img, k_img2, k_feat, k_param = jax.random.split(key, 4)

    image = jax.random.uniform(k_img, (N, C_IMG, H_IMG, W_IMG), jnp.float32, 0.0, 255.0)
    res5 = jax.random.normal(k_feat, (N, C_RES5, H_F, W_F), jnp.float32)
    params = init_params(k_param, C_RES5, NUM_CLASSES)

    pred_logits, probs, pred_mask, normalized = irnet_classification_forward(
        image, res5, params, threshold=THRESHOLD
    )
    jax.block_until_ready((pred_logits, probs, pred_mask, normalized))

    # Reference checks in plain JAX (PyTorch semantics).
    mean_b = params["pixel_mean"][None, :, None, None]
    std_b = params["pixel_std"][None, :, None, None]
    norm_ref = (image - mean_b) / std_b
    assert jnp.allclose(normalized, norm_ref, atol=1e-4, rtol=1e-5)

    # Also exercise the lane-padding path (H*W not a multiple of 128).
    image_odd = jax.random.uniform(k_img2, (1, C_IMG, 10, 13), jnp.float32, 0.0, 255.0)
    norm_odd = preprocess_images(image_odd, params["pixel_mean"], params["pixel_std"])
    jax.block_until_ready(norm_odd)
    norm_odd_ref = (image_odd - mean_b) / std_b
    assert jnp.allclose(norm_odd, norm_odd_ref, atol=1e-4, rtol=1e-5)

    pooled_ref = res5.mean(axis=(2, 3))                                     # [N, C]
    logits_ref = pooled_ref @ params["cls_weight"].reshape(NUM_CLASSES, C_RES5).T
    logits_ref = logits_ref.reshape(-1)
    assert jnp.allclose(pred_logits, logits_ref, atol=1e-5, rtol=1e-5)
    assert jnp.allclose(probs, jax.nn.sigmoid(logits_ref), atol=1e-5, rtol=1e-5)
    assert pred_mask.shape == (N * NUM_CLASSES,)

    print("KERNEL_OK")
</pallas_src>

<mosaic_0001>
module attributes {stable_mosaic.version = 11 : i64} {
  func.func @_preprocess_kernel(%arg0: i32, %arg1: i32, %arg2: memref<6x4096xf32, #tpu.memory_space<vmem>>, %arg3: memref<6x1xf32, #tpu.memory_space<vmem>>, %arg4: memref<6x1xf32, #tpu.memory_space<vmem>>, %arg5: memref<6x4096xf32, #tpu.memory_space<vmem>>) attributes {dimension_semantics = [#tpu.dimension_semantics<parallel>, #tpu.dimension_semantics<parallel>], iteration_bounds = array<i64: 1, 3>, scalar_prefetch = 0 : i64, scratch_operands = 0 : i64, tpu.core_type = #tpu.core_type<tc>, window_params = [{transform_indices = @transform_0, window_bounds = array<i64: 6, 4096>}, {transform_indices = @transform_1, window_bounds = array<i64: 6, 1>}, {transform_indices = @transform_2, window_bounds = array<i64: 6, 1>}, {transform_indices = @transform_3, window_bounds = array<i64: 6, 4096>}]} {
    %c0 = arith.constant 0 : index
    %c0_0 = arith.constant 0 : index
    %0 = vector.load %arg2[%c0, %c0_0] : memref<6x4096xf32, #tpu.memory_space<vmem>>, vector<6x4096xf32>
    %c0_1 = arith.constant 0 : index
    %c0_2 = arith.constant 0 : index
    %1 = vector.load %arg3[%c0_1, %c0_2] : memref<6x1xf32, #tpu.memory_space<vmem>>, vector<6x1xf32>
    %2 = vector.broadcast %1 : vector<6x1xf32> to vector<6x4096xf32>
    %3 = arith.mulf %0, %2 : vector<6x4096xf32>
    %c0_3 = arith.constant 0 : index
    %c0_4 = arith.constant 0 : index
    %4 = vector.load %arg4[%c0_3, %c0_4] : memref<6x1xf32, #tpu.memory_space<vmem>>, vector<6x1xf32>
    %5 = vector.broadcast %4 : vector<6x1xf32> to vector<6x4096xf32>
    %6 = arith.addf %3, %5 : vector<6x4096xf32>
    %c0_5 = arith.constant 0 : index
    %c0_6 = arith.constant 0 : index
    %7 = vector.load %arg5[%c0_5, %c0_6] : memref<6x4096xf32, #tpu.memory_space<vmem>>, vector<6x4096xf32>
    tpu.vector_store %arg5[%c0_5, %c0_6], %6 {strides = array<i32>} : memref<6x4096xf32, #tpu.memory_space<vmem>>, vector<6x4096xf32>,
    return
  }
  func.func @transform_0(%arg0: i32, %arg1: i32) -> (i32, i32) {
    %c0_i32 = arith.constant 0 : i32
    return %arg0, %arg1 : i32, i32
  }
  func.func @transform_1(%arg0: i32, %arg1: i32) -> (i32, i32) {
    %c0_i32 = arith.constant 0 : i32
    %c0_i32_0 = arith.constant 0 : i32
    return %arg0, %c0_i32 : i32, i32
  }
  func.func @transform_2(%arg0: i32, %arg1: i32) -> (i32, i32) {
    %c0_i32 = arith.constant 0 : i32
    %c0_i32_0 = arith.constant 0 : i32
    return %arg0, %c0_i32 : i32, i32
  }
  func.func @transform_3(%arg0: i32, %arg1: i32) -> (i32, i32) {
    %c0_i32 = arith.constant 0 : i32
    return %arg0, %arg1 : i32, i32
  }
}

</mosaic_0001>

<bundles_post_ra>
// kernel: tpu_custom_call.1
= control target key start
LH: loop header
LB: loop body
LE: loop exit
PB: predicated region body
PF: predicated region fallthrough
CT: control target
= control target key end

     0   :  { %8 = vsyncpa [#allocation3], 0  ;;  %s999_s0 = inlined_call_operand.hbm [shape: f32[6,12288], index: 0, kind: input, shape index: {}]   ;;  %s1000_s1 = inlined_call_operand.vmem [shape: f32[6,1], index: 1, kind: input, shape index: {}]   ;;  %s1001_s2 = inlined_call_operand.vmem [shape: f32[6,1], index: 2, kind: input, shape index: {}]   ;;  %s1002_s3 = inlined_call_operand.hbm [shape: f32[6,12288], index: 3, kind: output, shape index: {}]  }
   0x1   :  { %10 = vsyncpa [#allocation3 + $0x1], 0 }
   0x2   :  { %11 = vsyncpa [#allocation4], 0 }
   0x3   :  { %13 = vsyncpa [#allocation4 + $0x1], 0  ;;  %s734_s12 = smov 0   ;;  %s736_s13 = smov 0  }
   0x4   :  { %s738_s14 = smov 0   ;;  %s740_s15 = smov 0  }
   0x5   :  { %s742_s16 = smov 0   ;;  %s744_s17 = smov 0  }
   0x6 LB: > { %s516_s18 = sadd.s32 4294967295, %s711_s17   ;;  %s517_s19 = sadd.s32 4294967294, %s711_s17   ;;  %s711_s17 = sphi %s744_s17, %s19_s17   ;;  %s707_s16 = sphi %s742_s16, %s1011_s16   ;;  %s703_s15 = sphi %s740_s15, %s1010_s15   ;;  %s699_s14 = sphi %s738_s14, %s1009_s14   ;;  %s695_s13 = sphi %s736_s13, %s1008_s13   ;;  %s691_s12 = sphi %s734_s12, %s1007_s12  }
   0x7   : > { %s28_s20 = sadd.s32 1, %s707_s16  ;;  %s40_s21 = sadd.s32 1, %s699_s14 }
   0x8   : > { %p29_p0 = scmp.ge.s32.totalorder %s28_s20, 3  ;;  %p47_p1 = scmp.ne.s32.totalorder %s699_s14, %s695_s13 }
   0x9   : > { %p48_p2 = scmp.eq.s32.totalorder %s711_s17, 0  ;;  %p53_p3 = scmp.ne.s32.totalorder %s695_s13, %s691_s12 }
   0xa   : > { %s1013_s20 = smov (%p29_p0, %s28_s20), 0  ;;  %p54_p5 = scmp.eq.s32.totalorder %s516_s18, 0 }
   0xb   : > { %p775_p4 = por %p48_p2, %p47_p1  ;;  %s36_s23 = ssub.s32 %s707_s16, %s1013_s20 }
   0xc   : > { %p131_p6 = scmp.eq.s32.totalorder %s516_s18, 2  ;;  %p38_p7 = scmp.eq.s32.totalorder %s36_s23, 0 }
   0xd   : > { %p781_p8 = por %p54_p5, %p53_p3  ;;  %p137_p10 = scmp.eq.s32.totalorder %s517_s19, 2 }
   0xe   : > { %p785_p9 = por %p131_p6, %p47_p1  ;;  %p547_p12 = scmp.lt.s32.totalorder %s711_s17, 3 }
   0xf   : > { %s790_s26 = scalar_select %p38_p7, %s699_s14, %s40_s21  }
  0x10   : > { %p792_p11 = por %p137_p10, %p53_p3  ;;  %s171_s28 = sand.u32 1, %s699_s14  }
  0x11   : > { %s522_s29 = sshll.u32 %s171_s28, 8  ;;  %s533_s30 = sshll.u32 %s707_s16, 8 }
  0x12   : > { %s182_s6 = scalar_lea.hbm %s999_s0, %s533_s30  ;;  %s175_s7 = scalar_lea.vmem [#allocation2], %s522_s29 }
  0x13   : > { %s186_s8 = sshll.u32 %s175_s7, 4  ;;  %s184_s9 = sshll.u32 %s182_s6, 4  ;;  %s187_s8 = int_to_ptr.vmem [resolvable:$true] %s186_s8  ;;  %s185_s9 = int_to_ptr.hbm [resolvable:$true] %s184_s9 }
  0x14   : > { %p540_p13 = pnand %p547_p12, %p775_p4  ;;  %p525_p0 = scmp.ge.s32.totalorder %s711_s17, 1 }
  0x15   : > { %p191_p1 = scmp.lt.s32.totalorder %s711_s17, 4  ;;  %s172_s10 = scalar_lea.sflag [#allocation3], %s171_s28 }
  0x16   : > { %542 = dma.hbm_to_vmem [thread:$0]  (!%p540_p13), %s185_s9, 4096, %s187_s8, %s172_s10  }
  0x17   : > { %p192_p2 = pnand %p525_p0, %p191_p1 }
  0x18   : > { %s807_s11 = sand.u32 (!%p192_p2), 1, %s695_s13  }
  0x19   : > { %195 = sbr.rel (%p192_p2) target bundleno = 192 (0xc0), region = 32  ;;  %s526_s18 = sshll.u32 (!%p192_p2), %s807_s11, 8 }
  0x1a   : > { %s198_s19 = scalar_lea.sflag (!%p192_p2), [#allocation3], %s807_s11  ;;  %s813_s21 = scalar_lea.vmem (!%p192_p2), [#allocation2], %s526_s18 }
  0x1e   : > { %682 = dma.done.wait (%p781_p8), %s198_s19, 4096  }
  0x1f   : > { %684 = vsyncadd (%p781_p8), %s198_s19, 4294963200  ;;  %v713_v0 = vmov 0   ;;  %v275_v1 = vld [vmem:[%s1000_s1] sm:$0x3f]  ;;  %v244_v5 = vld [vmem:[%s813_s21 + $0x8] sm:$0x3f] }
  0x20   : > { %598 = vset.pattern.permute.xlu0 %v713_v0  ;;  %v313_v2 = vld [vmem:[%s1001_s2] sm:$0x3f]  ;;  %v245_v6 = vld [vmem:[%s813_s21 + $0x10] sm:$0x3f]  ;;  %v246_v7 = vld [vmem:[%s813_s21 + $0x18] sm:$0x3f] }
  0x21   : > { %278 = vperm.xlu0 %598, %v275_v1   ;;  %v243_v4 = vld [vmem:[%s813_s21] sm:$0x3f]  ;;  %v248_v9 = vld [vmem:[%s813_s21 + $0x28] sm:$0x3f]  ;;  %v249_v14 = vld [vmem:[%s813_s21 + $0x30] sm:$0x3f] }
  0x22   : > { %v247_v8 = vld [vmem:[%s813_s21 + $0x20] sm:$0x3f]  ;;  %v250_v16 = vld [vmem:[%s813_s21 + $0x38] sm:$0x3f]  ;;  %v252_v24 = vld [vmem:[%s813_s21 + $0x48] sm:$0x3f] }
  0x23   : > { %v251_v21 = vld [vmem:[%s813_s21 + $0x40] sm:$0x3f]  ;;  %s853_s24 = scalar_lea.vmem [#allocation5], %s526_s18  ;;  %v253_v27 = vld [vmem:[%s813_s21 + $0x50] sm:$0x3f]  ;;  %s534_s30 = sshll.u32 %s703_s15, 8 }
  0x24   : > { %v254_v30 = vld [vmem:[%s813_s21 + $0x58] sm:$0x3f]  ;;  %v255_v33 = vld [vmem:[%s813_s21 + $0x60] sm:$0x3f]  ;;  %v256_v36 = vld [vmem:[%s813_s21 + $0x68] sm:$0x3f]  ;;  %s397_s5 = scalar_lea.hbm %s1002_s3, %s534_s30 }
  0x25   : > { %v257_v39 = vld [vmem:[%s813_s21 + $0x70] sm:$0x3f]  ;;  %v258_v42 = vld [vmem:[%s813_s21 + $0x78] sm:$0x3f]  ;;  %v259_v45 = vld [vmem:[%s813_s21 + $0x80] sm:$0x3f] }
  0x26   : > { %v260_v48 = vld [vmem:[%s813_s21 + $0x88] sm:$0x3f]  ;;  %v261_v51 = vld [vmem:[%s813_s21 + $0x90] sm:$0x3f]  ;;  %v262_v54 = vld [vmem:[%s813_s21 + $0x98] sm:$0x3f] }
  0x27   : > { %v263_v57 = vld [vmem:[%s813_s21 + $0xa0] sm:$0x3f]  ;;  %v264_v60 = vld [vmem:[%s813_s21 + $0xa8] sm:$0x3f]  ;;  %v265_v63 = vld [vmem:[%s813_s21 + $0xb0] sm:$0x3f] }
  0x28   : > { %s399_s6 = sshll.u32 %s853_s24, 4  ;;  %s401_s7 = sshll.u32 %s397_s5, 4  ;;  %s400_s6 = int_to_ptr.vmem [resolvable:$true] %s399_s6  ;;  %s402_s7 = int_to_ptr.hbm [resolvable:$true] %s401_s7 }
  0x29   : > { %316 = vperm.xlu0 %598, %v313_v2   ;;  %v266_v2 = vld [vmem:[%s813_s21 + $0xb8] sm:$0x3f]  ;;  %s384_s8 = scalar_lea.sflag [#allocation4], %s807_s11  ;;  %s643_s9 = sshra.s32 %s402_s7, 4  ;;  %s644_s9 = int_to_ptr.hbm [resolvable:$true] %s643_s9 }
  0x2a   : > { %s645_s10 = scalar_lea.hbm %s644_s9, 256  ;;  %p650_p6 = scmp.lt.s32.totalorder %s644_s9, %s1002_s3 }
  0x2b   : > { %p646_p3 = scmp.ne.s32.totalorder %s644_s9, %s645_s10 }
  0x2d   : > { %p647_p4 = pnand %p646_p3, %p785_p9 }
  0x2f   : > { %p648_p5 = pneg %p647_p4 }
  0x93   : > { %v825_v3 = vpop.permute.xlu0 %278 }
  0x94   : > { %v281_v10 = vmul.f32 %v825_v3, %v243_v4  ;;  %v282_v11 = vmul.f32 %v825_v3, %v244_v5  ;;  %v283_v12 = vmul.f32 %v825_v3, %v245_v6  ;;  %v284_v15 = vmul.f32 %v825_v3, %v246_v7  ;;  %v267_v6 = vld [vmem:[%s813_s21 + $0xc0] sm:$0x3f] }
  0x95   : > { %v285_v17 = vmul.f32 %v825_v3, %v247_v8  ;;  %v286_v22 = vmul.f32 %v825_v3, %v248_v9  ;;  %v287_v25 = vmul.f32 %v825_v3, %v249_v14  ;;  %v288_v28 = vmul.f32 %v825_v3, %v250_v16  ;;  %v268_v9 = vld [vmem:[%s813_s21 + $0xc8] sm:$0x3f]  ;;  %v270_v16 = vld [vmem:[%s813_s21 + $0xd8] sm:$0x3f] }
  0x96   : > { %v289_v31 = vmul.f32 %v825_v3, %v251_v21  ;;  %v290_v34 = vmul.f32 %v825_v3, %v252_v24  ;;  %v291_v37 = vmul.f32 %v825_v3, %v253_v27  ;;  %v292_v40 = vmul.f32 %v825_v3, %v254_v30 }
  0x97   : > { %v293_v43 = vmul.f32 %v825_v3, %v255_v33  ;;  %v294_v46 = vmul.f32 %v825_v3, %v256_v36  ;;  %v295_v49 = vmul.f32 %v825_v3, %v257_v39  ;;  %v296_v52 = vmul.f32 %v825_v3, %v258_v42 }
  0x98   : > { %v297_v55 = vmul.f32 %v825_v3, %v259_v45  ;;  %v298_v58 = vmul.f32 %v825_v3, %v260_v48  ;;  %v299_v61 = vmul.f32 %v825_v3, %v261_v51  ;;  %v300_v0 = vmul.f32 %v825_v3, %v262_v54 }
  0x99   : > { %v301_v4 = vmul.f32 %v825_v3, %v263_v57  ;;  %v302_v7 = vmul.f32 %v825_v3, %v264_v60  ;;  %v304_v14 = vmul.f32 %v825_v3, %v266_v2 }
  0x9b   : > { %v836_v13 = vpop.permute.xlu0 %316 }
  0x9c   : > { %v319_v18 = vadd.f32 %v836_v13, %v281_v10  ;;  %v320_v19 = vadd.f32 %v836_v13, %v282_v11  ;;  %v321_v20 = vadd.f32 %v836_v13, %v283_v12  ;;  %v322_v23 = vadd.f32 %v836_v13, %v284_v15  ;;  %v269_v12 = vld [vmem:[%s813_s21 + $0xd0] sm:$0x3f] }
  0x9d   : > { %v323_v26 = vadd.f32 %v836_v13, %v285_v17  ;;  %v324_v29 = vadd.f32 %v836_v13, %v286_v22  ;;  %v325_v32 = vadd.f32 %v836_v13, %v287_v25  ;;  %v326_v35 = vadd.f32 %v836_v13, %v288_v28  ;;  %v272_v22 = vld [vmem:[%s813_s21 + $0xe8] sm:$0x3f]  ;;  %v273_v25 = vld [vmem:[%s813_s21 + $0xf0] sm:$0x3f]  ;;  %v274_v28 = vld [vmem:[%s813_s21 + $0xf8] sm:$0x3f] }
  0x9e   : > { %351 = vst [vmem:[%s853_s24] sm:$0x3f] %v319_v18  ;;  %v327_v38 = vadd.f32 %v836_v13, %v289_v31  ;;  %v328_v41 = vadd.f32 %v836_v13, %v290_v34  ;;  %v329_v44 = vadd.f32 %v836_v13, %v291_v37  ;;  %v330_v47 = vadd.f32 %v836_v13, %v292_v40 }
  0x9f   : > { %352 = vst [vmem:[%s853_s24 + $0x8] sm:$0x3f] %v320_v19  ;;  %v331_v50 = vadd.f32 %v836_v13, %v293_v43  ;;  %v332_v53 = vadd.f32 %v836_v13, %v294_v46  ;;  %v333_v56 = vadd.f32 %v836_v13, %v295_v49  ;;  %v334_v59 = vadd.f32 %v836_v13, %v296_v52  ;;  %v271_v19 = vld [vmem:[%s813_s21 + $0xe0] sm:$0x3f]  ;;  %s649_s21 = scalar_lea.hbm %s1002_s3, 768 }
  0xa0   : > { %353 = vst [vmem:[%s853_s24 + $0x10] sm:$0x3f] %v321_v20  ;;  %v335_v62 = vadd.f32 %v836_v13, %v297_v55  ;;  %v336_v1 = vadd.f32 %v836_v13, %v298_v58  ;;  %v337_v5 = vadd.f32 %v836_v13, %v299_v61  ;;  %v338_v8 = vadd.f32 %v836_v13, %v300_v0  ;;  %p651_p7 = scmp.lt.s32.totalorder %s649_s21, %s645_s10 }
  0xa1   : > { %354 = vst [vmem:[%s853_s24 + $0x18] sm:$0x3f] %v322_v23  ;;  %v303_v10 = vmul.f32 %v825_v3, %v265_v63  ;;  %v339_v11 = vadd.f32 %v836_v13, %v301_v4  ;;  %v340_v15 = vadd.f32 %v836_v13, %v302_v7  ;;  %v305_v17 = vmul.f32 %v825_v3, %v267_v6 }
  0xa2   : > { %355 = vst [vmem:[%s853_s24 + $0x20] sm:$0x3f] %v323_v26  ;;  %v306_v20 = vmul.f32 %v825_v3, %v268_v9  ;;  %v342_v21 = vadd.f32 %v836_v13, %v304_v14  ;;  %v307_v23 = vmul.f32 %v825_v3, %v269_v12  ;;  %v308_v26 = vmul.f32 %v825_v3, %v270_v16  ;;  %p652_p8 = por %p651_p7, %p650_p6 }
  0xa3   : > { %356 = vst [vmem:[%s853_s24 + $0x28] sm:$0x3f] %v324_v29  ;;  %v341_v18 = vadd.f32 %v836_v13, %v303_v10  ;;  %v343_v24 = vadd.f32 %v836_v13, %v305_v17  ;;  %v309_v29 = vmul.f32 %v825_v3, %v271_v19  ;;  %v310_v31 = vmul.f32 %v825_v3, %v272_v22 }
  0xa4   : > { %357 = vst [vmem:[%s853_s24 + $0x30] sm:$0x3f] %v325_v32  ;;  %v344_v27 = vadd.f32 %v836_v13, %v306_v20  ;;  %v345_v30 = vadd.f32 %v836_v13, %v307_v23  ;;  %v346_v32 = vadd.f32 %v836_v13, %v308_v26  ;;  %v311_v33 = vmul.f32 %v825_v3, %v273_v25  ;;  %p653_p10 = pnand %p652_p8, %p648_p5 }
  0xa5   : > { %358 = vst [vmem:[%s853_s24 + $0x38] sm:$0x3f] %v326_v35  ;;  %v347_v34 = vadd.f32 %v836_v13, %v309_v29  ;;  %v312_v35 = vmul.f32 %v825_v3, %v274_v28  ;;  %v348_v36 = vadd.f32 %v836_v13, %v310_v31 }
  0xa6   : > { %359 = vst [vmem:[%s853_s24 + $0x40] sm:$0x3f] %v327_v38  ;;  %v349_v37 = vadd.f32 %v836_v13, %v311_v33 }
  0xa7   : > { %360 = vst [vmem:[%s853_s24 + $0x48] sm:$0x3f] %v328_v41  ;;  %v350_v38 = vadd.f32 %v836_v13, %v312_v35 }
  0xa8   : > { %361 = vst [vmem:[%s853_s24 + $0x50] sm:$0x3f] %v329_v44 }
  0xa9   : > { %362 = vst [vmem:[%s853_s24 + $0x58] sm:$0x3f] %v330_v47 }
  0xaa   : > { %363 = vst [vmem:[%s853_s24 + $0x60] sm:$0x3f] %v331_v50 }
  0xab   : > { %364 = vst [vmem:[%s853_s24 + $0x68] sm:$0x3f] %v332_v53 }
  0xac   : > { %365 = vst [vmem:[%s853_s24 + $0x70] sm:$0x3f] %v333_v56 }
  0xad   : > { %366 = vst [vmem:[%s853_s24 + $0x78] sm:$0x3f] %v334_v59 }
  0xae   : > { %367 = vst [vmem:[%s853_s24 + $0x80] sm:$0x3f] %v335_v62 }
  0xaf   : > { %368 = vst [vmem:[%s853_s24 + $0x88] sm:$0x3f] %v336_v1 }
  0xb0   : > { %369 = vst [vmem:[%s853_s24 + $0x90] sm:$0x3f] %v337_v5 }
  0xb1   : > { %370 = vst [vmem:[%s853_s24 + $0x98] sm:$0x3f] %v338_v8 }
  0xb2   : > { %371 = vst [vmem:[%s853_s24 + $0xa0] sm:$0x3f] %v339_v11 }
  0xb3   : > { %372 = vst [vmem:[%s853_s24 + $0xa8] sm:$0x3f] %v340_v15 }
  0xb4   : > { %373 = vst [vmem:[%s853_s24 + $0xb0] sm:$0x3f] %v341_v18 }
  0xb5   : > { %374 = vst [vmem:[%s853_s24 + $0xb8] sm:$0x3f] %v342_v21 }
  0xb6   : > { %375 = vst [vmem:[%s853_s24 + $0xc0] sm:$0x3f] %v343_v24 }
  0xb7   : > { %376 = vst [vmem:[%s853_s24 + $0xc8] sm:$0x3f] %v344_v27 }
  0xb8   : > { %377 = vst [vmem:[%s853_s24 + $0xd0] sm:$0x3f] %v345_v30 }
  0xb9   : > { %378 = vst [vmem:[%s853_s24 + $0xd8] sm:$0x3f] %v346_v32 }
  0xba   : > { %379 = vst [vmem:[%s853_s24 + $0xe0] sm:$0x3f] %v347_v34 }
  0xbb   : > { %380 = vst [vmem:[%s853_s24 + $0xe8] sm:$0x3f] %v348_v36 }
  0xbc   : > { %381 = vst [vmem:[%s853_s24 + $0xf0] sm:$0x3f] %v349_v37 }
  0xbd   : > { %382 = vst [vmem:[%s853_s24 + $0xf8] sm:$0x3f] %v350_v38 }
  0xbe   : > { %656 = shalt.err (!%p653_p10)
}
  0xbf   : > { %537 = dma.vmem_to_hbm [thread:$0]  (%p785_p9), %s400_s6, 4096, %s402_s7, %s384_s8  }
  0xc0 PF: > { %p548_p12 = scmp.ge.s32.totalorder %s711_s17, 2  ;;  %s413_s11 = sand.u32 1, %s691_s12  }
  0xc1   : > { %s414_s28 = scalar_lea.sflag [#allocation4], %s413_s11 }
  0xc2   : > { %p544_p13 = pnand %p548_p12, %p792_p11 }
  0xc4   : > { %p545_p0 = pneg %p544_p13 }
  0xc6   : > { %686 = dma.done.wait (%p545_p0), %s414_s28, 4096  }
  0xc7   : > { %688 = vsyncadd (%p545_p0), %s414_s28, 4294963200  ;;  %s19_s17 = sadd.s32 1, %s711_s17   ;;  %s1007_s12 = smov %s695_s13 }
  0xc8   : > { %p16_p1 = scmp.ge.s32.totalorder %s19_s17, 5   ;;  %s1008_s13 = smov %s699_s14 }
  0xc9   : > { %s1009_s14 = smov %s790_s26  ;;  %s1010_s15 = smov %s707_s16 }
  0xca   : > { %s1011_s16 = smov %s1013_s20  ;;  %18 = sbr.rel (!%p16_p1) target bundleno = 6 (0x6), region = 83 }
  0xcf   :  { %420 = vsyncpa [#allocation3], 1 }
  0xd0   :  { %422 = vsyncpa [#allocation3 + $0x1], 1 }
  0xd1   :  { %423 = vsyncpa [#allocation4], 1 }
  0xd2   :  { %425 = vsyncpa [#allocation4 + $0x1], 1 }

</bundles_post_ra>
